<compile_context>
chip_gen: v5e
topology: v5e:2x2
jax: 0.10.0
libtpu: 0.0.40
codegen_flags: <defaults>
</compile_context>

<pallas_src>
import jax
import jax.numpy as jnp
from jax.experimental import pallas as pl
from jax.experimental.pallas import tpu as pltpu


def _linear_kernel(w_ref, b_ref, x_ref, o_ref):
    # w_ref / b_ref: (1, 1) f32 SMEM scalars (whole-array, persist across grid).
    # x_ref / o_ref: lane-dense (tile_rows, lanes) VMEM tiles in the input dtype.
    # One sreg read + scalar cast, then a single VPU multiply-add per tile.
    w = w_ref[0, 0].astype(x_ref.dtype)
    b = b_ref[0, 0].astype(x_ref.dtype)
    o_ref[...] = x_ref[...] * w + b


def _linear_lanedense(x2d, w_s, b_s, tile_rows):
    """Core kernel on an already lane-dense (rows, lanes) buffer (no relayout)."""
    rows, lanes = x2d.shape
    assert rows % tile_rows == 0, "rows must be a multiple of tile_rows"
    itemsize = jnp.dtype(x2d.dtype).itemsize
    block_bytes = tile_rows * lanes * itemsize
    n_elems = rows * lanes
    # Enough for double-buffered in+out blocks, floor 32 MiB (beats v5e's 16 MiB
    # scoped default), capped below v7x's 64 MiB physical VMEM.
    vmem_limit = int(min(56 * 2**20, max(32 * 2**20, 6 * block_bytes)))

    return pl.pallas_call(
        _linear_kernel,
        out_shape=jax.ShapeDtypeStruct((rows, lanes), x2d.dtype),
        grid=(rows // tile_rows,),
        in_specs=[
            pl.BlockSpec(memory_space=pltpu.SMEM),               # weight scalar
            pl.BlockSpec(memory_space=pltpu.SMEM),               # bias scalar
            pl.BlockSpec((tile_rows, lanes), lambda i: (i, 0)),  # x tile
        ],
        out_specs=pl.BlockSpec((tile_rows, lanes), lambda i: (i, 0)),
        compiler_params=pltpu.CompilerParams(
            dimension_semantics=("parallel",),   # independent tiles
            vmem_limit_bytes=vmem_limit,
        ),
        cost_estimate=pl.CostEstimate(
            flops=2 * n_elems,
            transcendentals=0,
            bytes_accessed=2 * n_elems * itemsize,
        ),
    )(w_s, b_s, x2d)


def linear_forward(x, weight, bias, *, lanes=1024, max_tile_rows=1024,
                   min_kernel_elems=8 * 1024):
    """y = x @ weight.T + bias for in_features = out_features = 1.

    x: (N, 1), weight: (1, 1), bias: (1,).  Returns (N, 1) in x.dtype,
    matching nn.Linear(1, 1)(x) semantics.
    """
    n, f = x.shape
    assert f == 1 and weight.shape == (1, 1) and bias.shape == (1,)

    w_s = weight.reshape(1, 1).astype(jnp.float32)
    b_s = bias.reshape(1, 1).astype(jnp.float32)

    # --- Small-N bypass (also guards N == 0): a fused XLA elementwise beats a
    # pallas_call launch + relayout when there is less than ~one tile of work.
    if n < max(min_kernel_elems, lanes):
        w = w_s[0, 0].astype(x.dtype)
        b = b_s[0, 0].astype(x.dtype)
        return x * w + b

    # --- Lane-dense layout plumbing (wrapper only, not compute) --------------
    # View the N scalar samples as a (rows, lanes) slab; lanes is a multiple of
    # 128 so every store is an unmasked full-lane vst.  Pad/slice ops are only
    # emitted when N is not already an exact tile multiple.
    rows = pl.cdiv(n, lanes)
    tile_rows = min(max_tile_rows, rows)
    if tile_rows < rows:
        tile_rows = max(8, (tile_rows // 8) * 8)    # keep (8,128) block rule
    rows = pl.cdiv(rows, tile_rows) * tile_rows
    padded_n = rows * lanes

    flat = x.reshape(n)
    if padded_n != n:
        flat = jnp.pad(flat, (0, padded_n - n))
    x2d = flat.reshape(rows, lanes)

    out2d = _linear_lanedense(x2d, w_s, b_s, tile_rows)

    flat_out = out2d.reshape(padded_n)
    if padded_n != n:
        flat_out = flat_out[:n]                      # strip padded tail
    return flat_out.reshape(n, 1)


if __name__ == "__main__":
    key = jax.random.PRNGKey(0)
    kx1, kx2, kx3, kw, kb = jax.random.split(key, 5)

    # nn.Linear(1, 1)-style parameters (U(-1, 1) init bound for fan_in = 1).
    weight = jax.random.uniform(kw, (1, 1), jnp.float32, -1.0, 1.0)
    bias = jax.random.uniform(kb, (1,), jnp.float32, -1.0, 1.0)

    def ref(x):
        return x @ weight.T + bias

    # 1) Tiny batch (typical toy-regression size) -> XLA bypass path.
    x_small = jax.random.normal(kx1, (8, 1), dtype=jnp.float32)
    out_small = linear_forward(x_small, weight, bias)
    jax.block_until_ready(out_small)
    assert out_small.shape == (8, 1)
    assert jnp.allclose(out_small, ref(x_small), atol=1e-6)

    # 2) Pallas kernel path with a multi-step grid, padding, and tail slice.
    #    Small lanes / tile keep the demo shapes small while still pipelining.
    x_big = jax.random.normal(kx2, (8195, 1), dtype=jnp.float32)
    out_big = linear_forward(x_big, weight, bias,
                             lanes=128, max_tile_rows=16, min_kernel_elems=1024)
    jax.block_until_ready(out_big)
    assert out_big.shape == (8195, 1)
    assert jnp.allclose(out_big, ref(x_big), atol=1e-6)

    # 3) Exact-multiple batch: kernel path with zero pad / zero tail slice.
    x_even = jax.random.normal(kx3, (4096, 1), dtype=jnp.float32)
    out_even = linear_forward(x_even, weight, bias,
                              lanes=128, max_tile_rows=16, min_kernel_elems=1024)
    jax.block_until_ready(out_even)
    assert out_even.shape == (4096, 1)
    assert jnp.allclose(out_even, ref(x_even), atol=1e-6)

    print("KERNEL_OK")
</pallas_src>

<mosaic_0001>
module attributes {stable_mosaic.version = 11 : i64} {
  func.func @_linear_kernel(%arg0: i32, %arg1: memref<1x1xf32, #tpu.memory_space<smem>>, %arg2: memref<1x1xf32, #tpu.memory_space<smem>>, %arg3: memref<16x128xf32, #tpu.memory_space<vmem>>, %arg4: memref<16x128xf32, #tpu.memory_space<vmem>>) attributes {dimension_semantics = [#tpu.dimension_semantics<parallel>], iteration_bounds = array<i64: 5>, scalar_prefetch = 0 : i64, scratch_operands = 0 : i64, tpu.core_type = #tpu.core_type<tc>, window_params = [{transform_indices = @transform_0, window_bounds = array<i64: 1, 1>}, {transform_indices = @transform_1, window_bounds = array<i64: 1, 1>}, {transform_indices = @transform_2, window_bounds = array<i64: 16, 128>}, {transform_indices = @transform_3, window_bounds = array<i64: 16, 128>}]} {
    %c0 = arith.constant 0 : index
    %c0_0 = arith.constant 0 : index
    %0 = memref.load %arg1[%c0, %c0_0] : memref<1x1xf32, #tpu.memory_space<smem>>
    %c0_1 = arith.constant 0 : index
    %c0_2 = arith.constant 0 : index
    %1 = memref.load %arg2[%c0_1, %c0_2] : memref<1x1xf32, #tpu.memory_space<smem>>
    %c0_3 = arith.constant 0 : index
    %c0_4 = arith.constant 0 : index
    %2 = vector.load %arg3[%c0_3, %c0_4] : memref<16x128xf32, #tpu.memory_space<vmem>>, vector<16x128xf32>
    %3 = vector.broadcast %0 : f32 to vector<16x128xf32>
    %4 = arith.mulf %2, %3 : vector<16x128xf32>
    %5 = vector.broadcast %1 : f32 to vector<16x128xf32>
    %6 = arith.addf %4, %5 : vector<16x128xf32>
    %c0_5 = arith.constant 0 : index
    %c0_6 = arith.constant 0 : index
    %7 = vector.load %arg4[%c0_5, %c0_6] : memref<16x128xf32, #tpu.memory_space<vmem>>, vector<16x128xf32>
    tpu.vector_store %arg4[%c0_5, %c0_6], %6 {strides = array<i32>} : memref<16x128xf32, #tpu.memory_space<vmem>>, vector<16x128xf32>,
    return
  }
  func.func @transform_0(%arg0: i32) -> (i32, i32) {
    %c0_i32 = arith.constant 0 : i32
    %c0_i32_0 = arith.constant 0 : i32
    %c0_i32_1 = arith.constant 0 : i32
    return %c0_i32, %c0_i32_0 : i32, i32
  }
  func.func @transform_1(%arg0: i32) -> (i32, i32) {
    %c0_i32 = arith.constant 0 : i32
    %c0_i32_0 = arith.constant 0 : i32
    %c0_i32_1 = arith.constant 0 : i32
    return %c0_i32, %c0_i32_0 : i32, i32
  }
  func.func @transform_2(%arg0: i32) -> (i32, i32) {
    %c0_i32 = arith.constant 0 : i32
    %c0_i32_0 = arith.constant 0 : i32
    return %arg0, %c0_i32 : i32, i32
  }
  func.func @transform_3(%arg0: i32) -> (i32, i32) {
    %c0_i32 = arith.constant 0 : i32
    %c0_i32_0 = arith.constant 0 : i32
    return %arg0, %c0_i32 : i32, i32
  }
}

</mosaic_0001>

<bundles_post_ra>
// kernel: tpu_custom_call.1
= control target key start
LH: loop header
LB: loop body
LE: loop exit
PB: predicated region body
PF: predicated region fallthrough
CT: control target
= control target key end

     0   :  { %s615_s0 = inlined_call_operand.<no memory space> [shape: f32[1,1], index: 0, kind: input, shape index: {}]   ;;  %s616_s1 = inlined_call_operand.<no memory space> [shape: f32[1,1], index: 1, kind: input, shape index: {}]   ;;  %s617_s2 = inlined_call_operand.hbm [shape: f32[80,128], index: 2, kind: input, shape index: {}]   ;;  %s618_s3 = inlined_call_operand.hbm [shape: f32[80,128], index: 3, kind: output, shape index: {}]  }
   0x1   :  { %8 = sst [smem:[#allocation2]] %s615_s0 }
   0x2   :  { %9 = sst [smem:[#allocation3]] %s616_s1 }
   0x3   :  { %10 = vsyncpa [#allocation5], 0 }
   0x4   :  { %12 = vsyncpa [#allocation5 + $0x1], 0 }
   0x5   :  { %13 = vsyncpa [#allocation6], 0 }
   0x6   :  { %15 = vsyncpa [#allocation6 + $0x1], 0  ;;  %s490_s16 = smov 0   ;;  %s492_s17 = smov 0  }
   0x7   :  { %s494_s18 = smov 0   ;;  %s496_s19 = smov 0  }
   0x8 LB: > { %s511_s0 = sadd.s32 4294967295, %s458_s19   ;;  %s296_s1 = sadd.s32 4294967294, %s458_s19   ;;  %s458_s19 = sphi %s496_s19, %s627_s19   ;;  %s454_s18 = sphi %s494_s18, %s626_s18   ;;  %s450_s17 = sphi %s492_s17, %s625_s17   ;;  %s446_s16 = sphi %s490_s16, %s624_s16  }
   0x9   : > { %s515_s20 = sadd.s32 1, %s458_s19   ;;  %s70_s21 = sadd.s32 1, %s454_s18 }
   0xa   : > { %s67_s22 = ssub.s32 %s458_s19, %s515_s20  ;;  %p77_p0 = scmp.ne.s32.totalorder %s454_s18, %s450_s17 }
   0xb   : > { %p68_p1 = scmp.eq.s32.totalorder %s67_s22, 0  ;;  %p78_p2 = scmp.eq.s32.totalorder %s458_s19, 0 }
   0xc   : > { %p83_p3 = scmp.ne.s32.totalorder %s450_s17, %s446_s16  ;;  %p84_p4 = scmp.eq.s32.totalorder %s511_s0, 0 }
   0xd   : > { %s527_s23 = scalar_select %p68_p1, %s454_s18, %s70_s21  }
   0xe   : > { %p529_p5 = por %p78_p2, %p77_p0  ;;  %p533_p6 = por %p84_p4, %p83_p3 }
   0xf   : > { %p107_p7 = scmp.eq.s32.totalorder %s511_s0, 4  ;;  %p113_p8 = scmp.eq.s32.totalorder %s296_s1, 4 }
  0x10   : > { %p324_p9 = scmp.lt.s32.totalorder %s458_s19, 5  ;;  %s139_s28 = sand.u32 1, %s454_s18  }
  0x11   : > { %p539_p10 = por %p107_p7, %p77_p0  ;;  %p543_p11 = por %p113_p8, %p83_p3 }
  0x12   : > { %s310_s29 = sshll.u32 %s458_s19, 4  ;;  %s299_s30 = sshll.u32 %s139_s28, 4 }
  0x13   : > { %s148_s6 = scalar_lea.hbm %s617_s2, %s310_s29  ;;  %s143_s8 = scalar_lea.vmem [#allocation4], %s299_s30 }
  0x14   : > { %s149_s7 = sshll.u32 %s148_s6, 4  ;;  %s151_s9 = sshll.u32 %s143_s8, 4  ;;  %s150_s7 = int_to_ptr.hbm [resolvable:$true] %s149_s7  ;;  %s152_s9 = int_to_ptr.vmem [resolvable:$true] %s151_s9 }
  0x15   : > { %p554_p12 = pnand %p324_p9, %p529_p5  ;;  %p302_p13 = scmp.ge.s32.totalorder %s458_s19, 1 }
  0x16   : > { %p159_p0 = scmp.lt.s32.totalorder %s458_s19, 6  ;;  %s140_s11 = scalar_lea.sflag [#allocation5], %s139_s28 }
  0x17   : > { %s362_s12 = sshra.s32 %s150_s7, 4  ;;  %p366_p2 = pneg %p554_p12  ;;  %s363_s12 = int_to_ptr.hbm [resolvable:$true] %s362_s12 }
  0x18   : > { %s364_s13 = scalar_lea.hbm %s363_s12, 16  ;;  %s369_s1 = scalar_lea.hbm %s617_s2, 80 }
  0x19   : > { %p365_p1 = scmp.ne.s32.totalorder %s363_s12, %s364_s13  ;;  %p370_p5 = scmp.lt.s32.totalorder %s363_s12, %s617_s2 }
  0x1a   : > { %p371_p7 = scmp.lt.s32.totalorder %s369_s1, %s364_s13 }
  0x1b   : > { %p367_p3 = pnand %p366_p2, %p365_p1 }
  0x1c   : > { %p372_p8 = por %p371_p7, %p370_p5 }
  0x1d   : > { %p368_p4 = pneg %p367_p3 }
  0x1f   : > { %p373_p9 = pnand %p372_p8, %p368_p4 }
  0x21   : > { %376 = shalt.err (!%p373_p9)
}
  0x22   : > { %s460_s24 = smov 128   ;;  %s461_s28 = smov 8  }
  0x23   : > { %319 = dma.hbm_to_vmem [thread:$0]  (!%p554_p12), %s150_s7, 256, %s152_s9, %s140_s11, %s460_s24, %s460_s24, %s461_s28  }
  0x24   : > { %p160_p1 = pnand %p302_p13, %p159_p0 }
  0x25   : > { %s575_s29 = sand.u32 (!%p160_p1), 1, %s450_s17  }
  0x26   : > { %163 = sbr.rel (%p160_p1) target bundleno = 61 (0x3d), region = 32  ;;  %s303_s30 = sshll.u32 (!%p160_p1), %s575_s29, 4 }
  0x27   : > { %s166_s4 = scalar_lea.sflag (!%p160_p1), [#allocation5], %s575_s29  ;;  %s169_s5 = scalar_lea.vmem (!%p160_p1), [#allocation4], %s303_s30 }
  0x2b   : > { %437 = dma.done.wait (%p533_p6), %s166_s4, 256  }
  0x2c   : > { %439 = vsyncadd (%p533_p6), %s166_s4, 4294967040  ;;  %s195_s6 = sld [smem:[#allocation2]]  ;;  %s311_s8 = sshll.u32 %s511_s0, 4  ;;  %v197_v0 = vld [vmem:[%s169_s5] sm:$0xff]  ;;  %v198_v2 = vld [vmem:[%s169_s5 + $0x8] sm:$0xff] }
  0x2d   : > { %s196_s7 = sld [smem:[#allocation3]]  ;;  %s219_s11 = scalar_lea.hbm %s618_s3, %s311_s8 }
  0x2e   : > { %s192_s12 = scalar_lea.vmem [#allocation7], %s303_s30  ;;  %s222_s25 = sshll.u32 %s219_s11, 4  ;;  %s223_s25 = int_to_ptr.hbm [resolvable:$true] %s222_s25 }
  0x2f   : > { %s220_s13 = sshll.u32 %s192_s12, 4  ;;  %s208_s0 = scalar_lea.sflag [#allocation6], %s575_s29  ;;  %s221_s13 = int_to_ptr.vmem [resolvable:$true] %s220_s13 }
  0x30   : > { %s406_s14 = sshra.s32 %s223_s25, 4  ;;  %s412_s22 = scalar_lea.hbm %s618_s3, 80  ;;  %s407_s14 = int_to_ptr.hbm [resolvable:$true] %s406_s14 }
  0x31   : > { %s408_s15 = scalar_lea.hbm %s407_s14, 16  ;;  %p413_p0 = scmp.lt.s32.totalorder %s407_s14, %s618_s3 }
  0x32   : > { %v199_v1 = vstv %s195_s6  ;;  %p409_p6 = scmp.ne.s32.totalorder %s407_s14, %s408_s15  ;;  %p414_p2 = scmp.lt.s32.totalorder %s412_s22, %s408_s15 }
  0x33   : > { %v200_v3 = vmul.f32 %v199_v1, %v197_v0  ;;  %v202_v4 = vstv %s196_s7  ;;  %v201_v5 = vmul.f32 %v199_v1, %v198_v2 }
  0x34   : > { %p410_p12 = pnand %p409_p6, %p539_p10  ;;  %p415_p3 = por %p414_p2, %p413_p0 }
  0x35   : > { %v203_v6 = vadd.f32 %v202_v4, %v200_v3  ;;  %v204_v7 = vadd.f32 %v202_v4, %v201_v5 }
  0x36   : > { %p411_p13 = pneg %p410_p12 }
  0x37   : > { %205 = vst [vmem:[%s192_s12] sm:$0xff] %v203_v6 }
  0x38   : > { %206 = vst [vmem:[%s192_s12 + $0x8] sm:$0xff] %v204_v7  ;;  %p416_p4 = pnand %p415_p3, %p411_p13 }
  0x3a   : > { %419 = shalt.err (!%p416_p4)
}
  0x3b   : > { %s462_s29 = smov 128   ;;  %s463_s30 = smov 8  }
  0x3c   : > { %314 = dma.vmem_to_hbm [thread:$0]  (%p539_p10), %s221_s13, 256, %s223_s25, %s208_s0, %s462_s29, %s462_s29, %s463_s30  }
  0x3d PF: > { %p325_p5 = scmp.ge.s32.totalorder %s458_s19, 2  ;;  %s237_s4 = sand.u32 1, %s446_s16  }
  0x3e   : > { %s238_s5 = scalar_lea.sflag [#allocation6], %s237_s4 }
  0x3f   : > { %p321_p7 = pnand %p325_p5, %p543_p11 }
  0x41   : > { %p322_p8 = pneg %p321_p7 }
  0x43   : > { %441 = dma.done.wait (%p322_p8), %s238_s5, 256  }
  0x44   : > { %443 = vsyncadd (%p322_p8), %s238_s5, 4294967040  ;;  %p18_p9 = scmp.ge.s32.totalorder %s515_s20, 7   ;;  %s624_s16 = smov %s450_s17 }
  0x45   : > { %s625_s17 = smov %s454_s18  ;;  %s626_s18 = smov %s527_s23 }
  0x46   : > { %s627_s19 = smov %s515_s20  ;;  %20 = sbr.rel (!%p18_p9) target bundleno = 8 (0x8), region = 77 }
  0x4b   :  { %244 = vsyncpa [#allocation5], 1 }
  0x4c   :  { %246 = vsyncpa [#allocation5 + $0x1], 1 }
  0x4d   :  { %247 = vsyncpa [#allocation6], 1 }
  0x4e   :  { %249 = vsyncpa [#allocation6 + $0x1], 1 }

</bundles_post_ra>
